<compile_context>
chip_gen: v5e
topology: v5e:2x2
jax: 0.10.0
libtpu: 0.0.40
codegen_flags: <defaults>
</compile_context>

<pallas_src>
import math

import jax
import jax.numpy as jnp
import numpy as np
from jax.experimental import pallas as pl
from jax.experimental.pallas import tpu as pltpu

_BF16_SUBLANE = 16   # bf16 sublane tile (second-to-last dim)
_LANE = 128


def _round_up(x, m):
    return -(-x // m) * m


def _padded_tile_bytes(shape, dtype):
    """Rough VMEM footprint of one block (last dim -> 128 lanes, 2nd-last -> sublane tile)."""
    itemsize = np.dtype(dtype).itemsize
    sublane = 32 // itemsize            # 8 for f32, 16 for bf16
    s = list(shape)
    if len(s) >= 1:
        s[-1] = _round_up(s[-1], _LANE)
    if len(s) >= 2:
        s[-2] = _round_up(s[-2], sublane)
    n = 1
    for d in s:
        n *= int(d)
    return n * itemsize


def _pick_band(Ho, Wo_pad, max_m=256):
    """Largest divisor of Ho with band_h * Wo_pad <= max_m matmul rows per dot."""
    best = 1
    for d in range(1, Ho + 1):
        if Ho % d == 0 and d * Wo_pad <= max_m:
            best = d
    return best


def _pick_cout_tile(Cout):
    if Cout % 256 == 0:
        return 256
    if Cout % 128 == 0:
        return 128
    return Cout


def _downsample_conv_kernel(x_ref, w_ref, b_ref, o_ref):
    """One (batch, cout-tile, row-band) grid step of the stride-2 3x3 conv.

    x_ref: (1, 6*(Ho+1), Wo_pad, Cin) bf16 -- 6 pre-shifted tap slabs (full image,
           resident across cout-tile / row-band steps).  Slab t = (kh%2)*3 + kw holds
           padded_input[2r + kh%2, 2j + kw] at position (r, j).
    w_ref: (3, 3, Cin, tn) bf16
    b_ref: (1, tn) f32
    o_ref: (1, band_h, Wo_pad, tn) f32
    """
    band_h, Wo_pad, tn = o_ref.shape[1], o_ref.shape[2], o_ref.shape[3]
    Cin = x_ref.shape[3]
    rows_per_slab = x_ref.shape[1] // 6

    # first output row of this band (band axis = last grid axis)
    i0 = pl.multiple_of(pl.program_id(2) * band_h, band_h)

    acc = jnp.zeros((band_h * Wo_pad, tn), jnp.float32)
    for kh in range(3):
        for kw in range(3):
            slab = (kh % 2) * 3 + kw
            r0 = kh // 2
            # Slice along the untiled leading dim only -> no relayout copy.
            tap = x_ref[0, pl.ds(slab * rows_per_slab + r0 + i0, band_h), :, :]
            # Wo_pad % 16 == 0 => this reshape is a no-op view.
            acc += jnp.dot(tap.reshape(band_h * Wo_pad, Cin), w_ref[kh, kw],
                           preferred_element_type=jnp.float32)
    acc += b_ref[...]                                   # f32 bias broadcast (hoisted)
    o_ref[...] = acc.reshape(1, band_h, Wo_pad, tn).astype(o_ref.dtype)


def downsample_forward(x, weight, bias):
    """Conv2d(Cin, Cout, 3, stride=2, padding=1) forward, PyTorch semantics.

    x:      (B, Cin, H, W)    f32 (NCHW)
    weight: (Cout, Cin, 3, 3) f32 (OIHW)
    bias:   (Cout,)           f32
    returns (B, Cout, Ho, Wo) f32, Ho = (H-1)//2 + 1, Wo = (W-1)//2 + 1
    """
    B, Cin, H, W = x.shape
    Cout = weight.shape[0]
    Ho = (H + 2 - 3) // 2 + 1
    Wo = (W + 2 - 3) // 2 + 1
    Wo_pad = _round_up(Wo, _BF16_SUBLANE)

    # ---- one-pass layout prep (NCHW f32 -> padded NHWC bf16 -> 6 tap slabs) -------
    x_nhwc = jnp.transpose(x, (0, 2, 3, 1)).astype(jnp.bfloat16)   # cast fused w/ transpose
    HP, WP = 2 * Ho + 2, 2 * Wo + 2
    xp = jnp.pad(x_nhwc, ((0, 0), (1, HP - 1 - H), (1, WP - 1 - W), (0, 0)))
    # stride-2 phase split in one reshape+transpose: ph[b,p,q,r,c,ci] = xp[b, 2r+p, 2c+q, ci]
    ph = xp.reshape(B, Ho + 1, 2, Wo + 1, 2, Cin).transpose(0, 2, 4, 1, 3, 5)
    # pre-shifted column variants for kw = 0,1,2 -> no in-kernel sublane-offset slices
    col = [ph[:, :, 0, :, 0:Wo, :],        # kw=0 : even cols, offset 0
           ph[:, :, 1, :, 0:Wo, :],        # kw=1 : odd  cols, offset 0
           ph[:, :, 0, :, 1:Wo + 1, :]]    # kw=2 : even cols, offset 1
    slabs = jnp.stack(col, axis=2)                                  # (B, 2, 3, Ho+1, Wo, Cin)
    slabs = jnp.pad(slabs, ((0, 0), (0, 0), (0, 0), (0, 0), (0, Wo_pad - Wo), (0, 0)))
    slabs = slabs.reshape(B, 6 * (Ho + 1), Wo_pad, Cin)             # packed single array

    w_k = jnp.transpose(weight, (2, 3, 1, 0)).astype(jnp.bfloat16)  # (3, 3, Cin, Cout)
    b2d = bias.reshape(1, Cout).astype(jnp.float32)

    # ---- tiling --------------------------------------------------------------------
    tn = _pick_cout_tile(Cout)
    nt = Cout // tn
    band_h = _pick_band(Ho, Wo_pad)     # M-band keeps the f32 accumulator small
    nb = Ho // band_h

    slab_block = (1, 6 * (Ho + 1), Wo_pad, Cin)
    out_block = (1, band_h, Wo_pad, tn)

    working = (2 * _padded_tile_bytes(slab_block, jnp.bfloat16)
               + 2 * _padded_tile_bytes((3, 3, Cin, tn), jnp.bfloat16)
               + 2 * _padded_tile_bytes((1, tn), jnp.float32)
               + 2 * _padded_tile_bytes(out_block, jnp.float32))
    vmem_limit = int(min(max(2 * working + (4 << 20), 32 << 20), 96 << 20))

    flops = 2 * B * Ho * Wo_pad * 9 * Cin * Cout
    bytes_accessed = (slabs.size * 2 + w_k.size * 2 + b2d.size * 4
                      + B * Ho * Wo_pad * Cout * 4)

    out_nhwc = pl.pallas_call(
        _downsample_conv_kernel,
        out_shape=jax.ShapeDtypeStruct((B, Ho, Wo_pad, Cout), jnp.float32),
        grid_spec=pltpu.PrefetchScalarGridSpec(
            num_scalar_prefetch=0,
            grid=(B, nt, nb),
            in_specs=[
                # full-image slab block, constant across (cout-tile, band) -> stays resident
                pl.BlockSpec(slab_block, lambda b, t, r: (b, 0, 0, 0)),
                pl.BlockSpec((3, 3, Cin, tn), lambda b, t, r: (0, 0, 0, t)),
                pl.BlockSpec((1, tn), lambda b, t, r: (0, t)),
            ],
            out_specs=pl.BlockSpec(out_block, lambda b, t, r: (b, r, 0, t)),
        ),
        compiler_params=pltpu.CompilerParams(
            dimension_semantics=("parallel", "parallel", "parallel"),
            vmem_limit_bytes=vmem_limit),
        cost_estimate=pl.CostEstimate(flops=flops, transcendentals=0,
                                      bytes_accessed=bytes_accessed),
    )(slabs, w_k, b2d)

    # drop padded width columns, back to PyTorch NCHW
    out_nhwc = out_nhwc[:, :, :Wo, :]
    return jnp.transpose(out_nhwc, (0, 3, 1, 2))


def _reference(x, weight, bias):
    out = jax.lax.conv_general_dilated(
        x, weight, window_strides=(2, 2), padding=((1, 1), (1, 1)),
        dimension_numbers=("NCHW", "OIHW", "NCHW"))
    return out + bias.reshape(1, -1, 1, 1)


def _check(key, B, C, H, W):
    kx, kw_, kb = jax.random.split(key, 3)
    x = jax.random.normal(kx, (B, C, H, W), dtype=jnp.float32)
    # PyTorch Conv2d default init: U(-s, s), s = 1/sqrt(fan_in)
    s = 1.0 / math.sqrt(C * 9)
    weight = jax.random.uniform(kw_, (C, C, 3, 3), jnp.float32, -s, s)
    bias = jax.random.uniform(kb, (C,), jnp.float32, -s, s)

    out = jax.block_until_ready(downsample_forward(x, weight, bias))
    ref = jax.block_until_ready(_reference(x, weight, bias))
    assert out.shape == ref.shape, (out.shape, ref.shape)
    # bf16 MXU operands (f32 accumulation) => loosened tolerance vs f32 reference.
    np.testing.assert_allclose(np.asarray(out), np.asarray(ref), rtol=2e-2, atol=2e-2)


if __name__ == "__main__":
    key = jax.random.PRNGKey(0)
    k1, k2 = jax.random.split(key)
    _check(k1, B=2, C=4, H=16, W=16)   # demo shape from the module
    _check(k2, B=1, C=8, H=48, W=48)   # exercises multi-band grid (3 row bands) + width pad
    print("KERNEL_OK")
</pallas_src>

<mosaic_0001>
module attributes {stable_mosaic.version = 11 : i64} {
  func.func @_downsample_conv_kernel(%arg0: i32, %arg1: i32, %arg2: i32, %arg3: memref<1x54x16x4xbf16, #tpu.memory_space<vmem>>, %arg4: memref<3x3x4x4xbf16, #tpu.memory_space<vmem>>, %arg5: memref<1x4xf32, #tpu.memory_space<vmem>>, %arg6: memref<1x8x16x4xf32, #tpu.memory_space<vmem>>) attributes {dimension_semantics = [#tpu.dimension_semantics<parallel>, #tpu.dimension_semantics<parallel>, #tpu.dimension_semantics<parallel>], iteration_bounds = array<i64: 2, 1, 1>, scalar_prefetch = 0 : i64, scratch_operands = 0 : i64, tpu.core_type = #tpu.core_type<tc>, window_params = [{transform_indices = @transform_0, window_bounds = array<i64: 1, 54, 16, 4>}, {transform_indices = @transform_1, window_bounds = array<i64: 3, 3, 4, 4>}, {transform_indices = @transform_2, window_bounds = array<i64: 1, 4>}, {transform_indices = @transform_3, window_bounds = array<i64: 1, 8, 16, 4>}]} {
    %c8_i32 = arith.constant 8 : i32
    %0 = arith.muli %arg2, %c8_i32 : i32
    %1 = tpu.assume_multiple %0, 8 : i32
    %cst = arith.constant 0.000000e+00 : f32
    %2 = vector.broadcast %cst : f32 to vector<128x4xf32>
    %c0_i32 = arith.constant 0 : i32
    %3 = arith.addi %c0_i32, %1 : i32
    %c0 = arith.constant 0 : index
    %4 = arith.index_cast %3 : i32 to index
    %c0_0 = arith.constant 0 : index
    %c0_1 = arith.constant 0 : index
    %5 = vector.load %arg3[%c0, %4, %c0_0, %c0_1] : memref<1x54x16x4xbf16, #tpu.memory_space<vmem>>, vector<1x8x16x4xbf16>
    %6 = vector.shape_cast %5 : vector<1x8x16x4xbf16> to vector<8x16x4xbf16>
    %7 = vector.shape_cast %6 : vector<8x16x4xbf16> to vector<128x4xbf16>
    %c0_2 = arith.constant 0 : index
    %c0_3 = arith.constant 0 : index
    %c0_4 = arith.constant 0 : index
    %c0_5 = arith.constant 0 : index
    %8 = vector.load %arg4[%c0_2, %c0_3, %c0_4, %c0_5] : memref<3x3x4x4xbf16, #tpu.memory_space<vmem>>, vector<1x1x4x4xbf16>
    %9 = vector.shape_cast %8 : vector<1x1x4x4xbf16> to vector<4x4xbf16>
    %cst_6 = arith.constant dense<0.000000e+00> : vector<128x4xf32>
    %10 = tpu.matmul %7, %9, %cst_6 {dimension_numbers = #tpu.dot_dimension_numbers<[1], [0], [0], [1], [0, 0, 1, 1], [], []>} : vector<128x4xbf16>, vector<4x4xbf16>, vector<128x4xf32> -> vector<128x4xf32>
    %11 = arith.addf %2, %10 : vector<128x4xf32>
    %c9_i32 = arith.constant 9 : i32
    %12 = arith.addi %c9_i32, %1 : i32
    %c0_7 = arith.constant 0 : index
    %13 = arith.index_cast %12 : i32 to index
    %c0_8 = arith.constant 0 : index
    %c0_9 = arith.constant 0 : index
    %14 = vector.load %arg3[%c0_7, %13, %c0_8, %c0_9] : memref<1x54x16x4xbf16, #tpu.memory_space<vmem>>, vector<1x8x16x4xbf16>
    %15 = vector.shape_cast %14 : vector<1x8x16x4xbf16> to vector<8x16x4xbf16>
    %16 = vector.shape_cast %15 : vector<8x16x4xbf16> to vector<128x4xbf16>
    %c0_10 = arith.constant 0 : index
    %c1 = arith.constant 1 : index
    %c0_11 = arith.constant 0 : index
    %c0_12 = arith.constant 0 : index
    %17 = vector.load %arg4[%c0_10, %c1, %c0_11, %c0_12] : memref<3x3x4x4xbf16, #tpu.memory_space<vmem>>, vector<1x1x4x4xbf16>
    %18 = vector.shape_cast %17 : vector<1x1x4x4xbf16> to vector<4x4xbf16>
    %cst_13 = arith.constant dense<0.000000e+00> : vector<128x4xf32>
    %19 = tpu.matmul %16, %18, %cst_13 {dimension_numbers = #tpu.dot_dimension_numbers<[1], [0], [0], [1], [0, 0, 1, 1], [], []>} : vector<128x4xbf16>, vector<4x4xbf16>, vector<128x4xf32> -> vector<128x4xf32>
    %20 = arith.addf %11, %19 : vector<128x4xf32>
    %c18_i32 = arith.constant 18 : i32
    %21 = arith.addi %c18_i32, %1 : i32
    %c0_14 = arith.constant 0 : index
    %22 = arith.index_cast %21 : i32 to index
    %c0_15 = arith.constant 0 : index
    %c0_16 = arith.constant 0 : index
    %23 = vector.load %arg3[%c0_14, %22, %c0_15, %c0_16] : memref<1x54x16x4xbf16, #tpu.memory_space<vmem>>, vector<1x8x16x4xbf16>
    %24 = vector.shape_cast %23 : vector<1x8x16x4xbf16> to vector<8x16x4xbf16>
    %25 = vector.shape_cast %24 : vector<8x16x4xbf16> to vector<128x4xbf16>
    %c0_17 = arith.constant 0 : index
    %c2 = arith.constant 2 : index
    %c0_18 = arith.constant 0 : index
    %c0_19 = arith.constant 0 : index
    %26 = vector.load %arg4[%c0_17, %c2, %c0_18, %c0_19] : memref<3x3x4x4xbf16, #tpu.memory_space<vmem>>, vector<1x1x4x4xbf16>
    %27 = vector.shape_cast %26 : vector<1x1x4x4xbf16> to vector<4x4xbf16>
    %cst_20 = arith.constant dense<0.000000e+00> : vector<128x4xf32>
    %28 = tpu.matmul %25, %27, %cst_20 {dimension_numbers = #tpu.dot_dimension_numbers<[1], [0], [0], [1], [0, 0, 1, 1], [], []>} : vector<128x4xbf16>, vector<4x4xbf16>, vector<128x4xf32> -> vector<128x4xf32>
    %29 = arith.addf %20, %28 : vector<128x4xf32>
    %c27_i32 = arith.constant 27 : i32
    %30 = arith.addi %c27_i32, %1 : i32
    %c0_21 = arith.constant 0 : index
    %31 = arith.index_cast %30 : i32 to index
    %c0_22 = arith.constant 0 : index
    %c0_23 = arith.constant 0 : index
    %32 = vector.load %arg3[%c0_21, %31, %c0_22, %c0_23] : memref<1x54x16x4xbf16, #tpu.memory_space<vmem>>, vector<1x8x16x4xbf16>
    %33 = vector.shape_cast %32 : vector<1x8x16x4xbf16> to vector<8x16x4xbf16>
    %34 = vector.shape_cast %33 : vector<8x16x4xbf16> to vector<128x4xbf16>
    %c1_24 = arith.constant 1 : index
    %c0_25 = arith.constant 0 : index
    %c0_26 = arith.constant 0 : index
    %c0_27 = arith.constant 0 : index
    %35 = vector.load %arg4[%c1_24, %c0_25, %c0_26, %c0_27] : memref<3x3x4x4xbf16, #tpu.memory_space<vmem>>, vector<1x1x4x4xbf16>
    %36 = vector.shape_cast %35 : vector<1x1x4x4xbf16> to vector<4x4xbf16>
    %cst_28 = arith.constant dense<0.000000e+00> : vector<128x4xf32>
    %37 = tpu.matmul %34, %36, %cst_28 {dimension_numbers = #tpu.dot_dimension_numbers<[1], [0], [0], [1], [0, 0, 1, 1], [], []>} : vector<128x4xbf16>, vector<4x4xbf16>, vector<128x4xf32> -> vector<128x4xf32>
    %38 = arith.addf %29, %37 : vector<128x4xf32>
    %c36_i32 = arith.constant 36 : i32
    %39 = arith.addi %c36_i32, %1 : i32
    %c0_29 = arith.constant 0 : index
    %40 = arith.index_cast %39 : i32 to index
    %c0_30 = arith.constant 0 : index
    %c0_31 = arith.constant 0 : index
    %41 = vector.load %arg3[%c0_29, %40, %c0_30, %c0_31] : memref<1x54x16x4xbf16, #tpu.memory_space<vmem>>, vector<1x8x16x4xbf16>
    %42 = vector.shape_cast %41 : vector<1x8x16x4xbf16> to vector<8x16x4xbf16>
    %43 = vector.shape_cast %42 : vector<8x16x4xbf16> to vector<128x4xbf16>
    %c1_32 = arith.constant 1 : index
    %c1_33 = arith.constant 1 : index
    %c0_34 = arith.constant 0 : index
    %c0_35 = arith.constant 0 : index
    %44 = vector.load %arg4[%c1_32, %c1_33, %c0_34, %c0_35] : memref<3x3x4x4xbf16, #tpu.memory_space<vmem>>, vector<1x1x4x4xbf16>
    %45 = vector.shape_cast %44 : vector<1x1x4x4xbf16> to vector<4x4xbf16>
    %cst_36 = arith.constant dense<0.000000e+00> : vector<128x4xf32>
    %46 = tpu.matmul %43, %45, %cst_36 {dimension_numbers = #tpu.dot_dimension_numbers<[1], [0], [0], [1], [0, 0, 1, 1], [], []>} : vector<128x4xbf16>, vector<4x4xbf16>, vector<128x4xf32> -> vector<128x4xf32>
    %47 = arith.addf %38, %46 : vector<128x4xf32>
    %c45_i32 = arith.constant 45 : i32
    %48 = arith.addi %c45_i32, %1 : i32
    %c0_37 = arith.constant 0 : index
    %49 = arith.index_cast %48 : i32 to index
    %c0_38 = arith.constant 0 : index
    %c0_39 = arith.constant 0 : index
    %50 = vector.load %arg3[%c0_37, %49, %c0_38, %c0_39] : memref<1x54x16x4xbf16, #tpu.memory_space<vmem>>, vector<1x8x16x4xbf16>
    %51 = vector.shape_cast %50 : vector<1x8x16x4xbf16> to vector<8x16x4xbf16>
    %52 = vector.shape_cast %51 : vector<8x16x4xbf16> to vector<128x4xbf16>
    %c1_40 = arith.constant 1 : index
    %c2_41 = arith.constant 2 : index
    %c0_42 = arith.constant 0 : index
    %c0_43 = arith.constant 0 : index
    %53 = vector.load %arg4[%c1_40, %c2_41, %c0_42, %c0_43] : memref<3x3x4x4xbf16, #tpu.memory_space<vmem>>, vector<1x1x4x4xbf16>
    %54 = vector.shape_cast %53 : vector<1x1x4x4xbf16> to vector<4x4xbf16>
    %cst_44 = arith.constant dense<0.000000e+00> : vector<128x4xf32>
    %55 = tpu.matmul %52, %54, %cst_44 {dimension_numbers = #tpu.dot_dimension_numbers<[1], [0], [0], [1], [0, 0, 1, 1], [], []>} : vector<128x4xbf16>, vector<4x4xbf16>, vector<128x4xf32> -> vector<128x4xf32>
    %56 = arith.addf %47, %55 : vector<128x4xf32>
    %c1_i32 = arith.constant 1 : i32
    %57 = arith.addi %c1_i32, %1 : i32
    %c0_45 = arith.constant 0 : index
    %58 = arith.index_cast %57 : i32 to index
    %c0_46 = arith.constant 0 : index
    %c0_47 = arith.constant 0 : index
    %59 = vector.load %arg3[%c0_45, %58, %c0_46, %c0_47] : memref<1x54x16x4xbf16, #tpu.memory_space<vmem>>, vector<1x8x16x4xbf16>
    %60 = vector.shape_cast %59 : vector<1x8x16x4xbf16> to vector<8x16x4xbf16>
    %61 = vector.shape_cast %60 : vector<8x16x4xbf16> to vector<128x4xbf16>
    %c2_48 = arith.constant 2 : index
    %c0_49 = arith.constant 0 : index
    %c0_50 = arith.constant 0 : index
    %c0_51 = arith.constant 0 : index
    %62 = vector.load %arg4[%c2_48, %c0_49, %c0_50, %c0_51] : memref<3x3x4x4xbf16, #tpu.memory_space<vmem>>, vector<1x1x4x4xbf16>
    %63 = vector.shape_cast %62 : vector<1x1x4x4xbf16> to vector<4x4xbf16>
    %cst_52 = arith.constant dense<0.000000e+00> : vector<128x4xf32>
    %64 = tpu.matmul %61, %63, %cst_52 {dimension_numbers = #tpu.dot_dimension_numbers<[1], [0], [0], [1], [0, 0, 1, 1], [], []>} : vector<128x4xbf16>, vector<4x4xbf16>, vector<128x4xf32> -> vector<128x4xf32>
    %65 = arith.addf %56, %64 : vector<128x4xf32>
    %c10_i32 = arith.constant 10 : i32
    %66 = arith.addi %c10_i32, %1 : i32
    %c0_53 = arith.constant 0 : index
    %67 = arith.index_cast %66 : i32 to index
    %c0_54 = arith.constant 0 : index
    %c0_55 = arith.constant 0 : index
    %68 = vector.load %arg3[%c0_53, %67, %c0_54, %c0_55] : memref<1x54x16x4xbf16, #tpu.memory_space<vmem>>, vector<1x8x16x4xbf16>
    %69 = vector.shape_cast %68 : vector<1x8x16x4xbf16> to vector<8x16x4xbf16>
    %70 = vector.shape_cast %69 : vector<8x16x4xbf16> to vector<128x4xbf16>
    %c2_56 = arith.constant 2 : index
    %c1_57 = arith.constant 1 : index
    %c0_58 = arith.constant 0 : index
    %c0_59 = arith.constant 0 : index
    %71 = vector.load %arg4[%c2_56, %c1_57, %c0_58, %c0_59] : memref<3x3x4x4xbf16, #tpu.memory_space<vmem>>, vector<1x1x4x4xbf16>
    %72 = vector.shape_cast %71 : vector<1x1x4x4xbf16> to vector<4x4xbf16>
    %cst_60 = arith.constant dense<0.000000e+00> : vector<128x4xf32>
    %73 = tpu.matmul %70, %72, %cst_60 {dimension_numbers = #tpu.dot_dimension_numbers<[1], [0], [0], [1], [0, 0, 1, 1], [], []>} : vector<128x4xbf16>, vector<4x4xbf16>, vector<128x4xf32> -> vector<128x4xf32>
    %74 = arith.addf %65, %73 : vector<128x4xf32>
    %c19_i32 = arith.constant 19 : i32
    %75 = arith.addi %c19_i32, %1 : i32
    %c0_61 = arith.constant 0 : index
    %76 = arith.index_cast %75 : i32 to index
    %c0_62 = arith.constant 0 : index
    %c0_63 = arith.constant 0 : index
    %77 = vector.load %arg3[%c0_61, %76, %c0_62, %c0_63] : memref<1x54x16x4xbf16, #tpu.memory_space<vmem>>, vector<1x8x16x4xbf16>
    %78 = vector.shape_cast %77 : vector<1x8x16x4xbf16> to vector<8x16x4xbf16>
    %79 = vector.shape_cast %78 : vector<8x16x4xbf16> to vector<128x4xbf16>
    %c2_64 = arith.constant 2 : index
    %c2_65 = arith.constant 2 : index
    %c0_66 = arith.constant 0 : index
    %c0_67 = arith.constant 0 : index
    %80 = vector.load %arg4[%c2_64, %c2_65, %c0_66, %c0_67] : memref<3x3x4x4xbf16, #tpu.memory_space<vmem>>, vector<1x1x4x4xbf16>
    %81 = vector.shape_cast %80 : vector<1x1x4x4xbf16> to vector<4x4xbf16>
    %cst_68 = arith.constant dense<0.000000e+00> : vector<128x4xf32>
    %82 = tpu.matmul %79, %81, %cst_68 {dimension_numbers = #tpu.dot_dimension_numbers<[1], [0], [0], [1], [0, 0, 1, 1], [], []>} : vector<128x4xbf16>, vector<4x4xbf16>, vector<128x4xf32> -> vector<128x4xf32>
    %83 = arith.addf %74, %82 : vector<128x4xf32>
    %c0_69 = arith.constant 0 : index
    %c0_70 = arith.constant 0 : index
    %84 = vector.load %arg5[%c0_69, %c0_70] : memref<1x4xf32, #tpu.memory_space<vmem>>, vector<1x4xf32>
    %85 = vector.broadcast %84 : vector<1x4xf32> to vector<128x4xf32>
    %86 = arith.addf %83, %85 : vector<128x4xf32>
    %87 = vector.shape_cast %86 : vector<128x4xf32> to vector<1x8x16x4xf32>
    %c0_71 = arith.constant 0 : index
    %c0_72 = arith.constant 0 : index
    %c0_73 = arith.constant 0 : index
    %c0_74 = arith.constant 0 : index
    %88 = vector.load %arg6[%c0_71, %c0_72, %c0_73, %c0_74] : memref<1x8x16x4xf32, #tpu.memory_space<vmem>>, vector<1x8x16x4xf32>
    tpu.vector_store %arg6[%c0_71, %c0_72, %c0_73, %c0_74], %87 {strides = array<i32>} : memref<1x8x16x4xf32, #tpu.memory_space<vmem>>, vector<1x8x16x4xf32>,
    return
  }
  func.func @transform_0(%arg0: i32, %arg1: i32, %arg2: i32) -> (i32, i32, i32, i32) {
    %c0_i32 = arith.constant 0 : i32
    %c0_i32_0 = arith.constant 0 : i32
    %c0_i32_1 = arith.constant 0 : i32
    %c0_i32_2 = arith.constant 0 : i32
    return %arg0, %c0_i32, %c0_i32_0, %c0_i32_1 : i32, i32, i32, i32
  }
  func.func @transform_1(%arg0: i32, %arg1: i32, %arg2: i32) -> (i32, i32, i32, i32) {
    %c0_i32 = arith.constant 0 : i32
    %c0_i32_0 = arith.constant 0 : i32
    %c0_i32_1 = arith.constant 0 : i32
    %c0_i32_2 = arith.constant 0 : i32
    return %c0_i32, %c0_i32_0, %c0_i32_1, %arg1 : i32, i32, i32, i32
  }
  func.func @transform_2(%arg0: i32, %arg1: i32, %arg2: i32) -> (i32, i32) {
    %c0_i32 = arith.constant 0 : i32
    %c0_i32_0 = arith.constant 0 : i32
    return %c0_i32, %arg1 : i32, i32
  }
  func.func @transform_3(%arg0: i32, %arg1: i32, %arg2: i32) -> (i32, i32, i32, i32) {
    %c0_i32 = arith.constant 0 : i32
    %c0_i32_0 = arith.constant 0 : i32
    return %arg0, %arg2, %c0_i32, %arg1 : i32, i32, i32, i32
  }
}

</mosaic_0001>

<bundles_post_ra>
// kernel: tpu_custom_call.1
= control target key start
LH: loop header
LB: loop body
LE: loop exit
PB: predicated region body
PF: predicated region fallthrough
CT: control target
= control target key end

     0   :  { %s2449_s12 = smov 0   ;;  %s2451_s13 = smov 0   ;;  %s2807_s0 = inlined_call_operand.vmem [shape: bf16[2,54,16,4], index: 0, kind: input, shape index: {}]   ;;  %s2808_s1 = inlined_call_operand.vmem [shape: bf16[3,3,4,4], index: 1, kind: input, shape index: {}]   ;;  %s2809_s2 = inlined_call_operand.vmem [shape: f32[1,4], index: 2, kind: input, shape index: {}]   ;;  %s2810_s3 = inlined_call_operand.vmem [shape: f32[2,8,16,4], index: 3, kind: output, shape index: {}]  }
   0x1   :  { %s2453_s14 = smov 0  }
   0x2 LB: > { %s32_s15 = sadd.s32 1, %s2423_s13  ;;  %p1801_p0 = scmp.ge.s32.totalorder %s2427_s14, 1  ;;  %s2427_s14 = sphi %s2453_s14, %s13_s14   ;;  %s2423_s13 = sphi %s2451_s13, %s2812_s13   ;;  %s2419_s12 = sphi %s2449_s12, %s2811_s12  }
   0x3   : > { %p34_p1 = scmp.ge.s32.totalorder %s32_s15, 2  ;;  %p177_p2 = scmp.lt.s32.totalorder %s2427_s14, 3 }
   0x5   : > { %s2814_s15 = smov (%p34_p1, %s32_s15), 0  ;;  %p178_p3 = pnand %p1801_p0, %p177_p2 }
   0x6   : > { %p216_p4 = scmp.lt.s32.totalorder (!%p178_p3), %s2419_s12, 1 }
   0x7   : > { %181 = sbr.rel (%p178_p3) target bundleno = 441 (0x1b9), region = 32 }
   0xc   : > { %v1821_v0 = vld [vmem:[%s2808_s1 + $0x2] sm:$0x3]  ;;  %vm351_vm0 = vcmask 1041408   ;;  %v1918_v2 = vld [vmem:[%s2808_s1 + $0x4] sm:$0x3]  ;;  %s2816_s12 = smov (!%p216_p4, %s2419_s12), 1 }
   0xd   : > { %v353_v1 = vsel %vm351_vm0, %v1821_v0, 0  ;;  %v1975_v3 = vld [vmem:[%s2808_s1 + $0x6] sm:$0x3]  ;;  %v607_v4 = vsel %vm351_vm0, %v1918_v2, 0  ;;  %v263_v6 = vld [vmem:[%s2808_s1] sm:$0x3] }
   0xe   : > { %2376 = vmatpush.bf16.msra.mxu1 %v353_v1  ;;  %2377 = vmatpush.bf16.msra.mxu2 %v353_v1  ;;  %v761_v5 = vsel %vm351_vm0, %v1975_v3, 0  ;;  %v469_v7 = vsel %vm351_vm0, %v263_v6, 0  ;;  %v2032_v8 = vld [vmem:[%s2808_s1 + $0x8] sm:$0x3]  ;;  %s2379_s26 = smul.u32 432, %s2816_s12  ;;  %vm326_vm1 = vcmask 31744  }
   0xf   : > { %2378 = vmatpush.bf16.msra.mxu3 %v353_v1  ;;  %362 = vmatpush.bf16.msra.mxu0 %v353_v1  ;;  %v915_v9 = vsel %vm351_vm0, %v2032_v8, 0  ;;  %v2146_v14 = vld [vmem:[%s2808_s1 + $0xc] sm:$0x3]  ;;  %v2203_v16 = vld [vmem:[%s2808_s1 + $0xe] sm:$0x3]  ;;  %s2303_s11 = sshll.u32 %s2816_s12, 7 }
  0x10   : > { %s2493_s29 = scalar_lea.vmem %s2807_s0, %s2379_s26  ;;  %v1223_v15 = vsel %vm351_vm0, %v2146_v14, 0  ;;  %v2089_v17 = vld [vmem:[%s2808_s1 + $0xa] sm:$0x3]  ;;  %v1377_v18 = vsel %vm351_vm0, %v2203_v16, 0  ;;  %v2260_v20 = vld [vmem:[%s2808_s1 + $0x10] sm:$0x3]  ;;  %s2733_s20 = scalar_lea.vmem %s2810_s3, %s2303_s11 }
  0x11   : > { %v2314_v10 = vld [vmem:[%s2493_s29 + $0x58] sm:$0xff]  ;;  %v2316_v11 = vld [vmem:[%s2493_s29 + $0x68] sm:$0xff]  ;;  %v1069_v19 = vsel %vm351_vm0, %v2089_v17, 0  ;;  %v1531_v21 = vsel %vm351_vm0, %v2260_v20, 0  ;;  %v2315_v22 = vld [vmem:[%s2493_s29 + $0x60] sm:$0xff] }
  0x12   : > { %616 = vmatpush.bf16.msrb.mxu2 %v607_v4  ;;  %478 = vmatpush.bf16.msrb.mxu1 %v469_v7  ;;  %v2318_v12 = vld [vmem:[%s2493_s29 + $0x78] sm:$0xff]  ;;  %v2312_v13 = vld [vmem:[%s2493_s29 + $0x48] sm:$0xff]  ;;  %v2317_v23 = vld [vmem:[%s2493_s29 + $0x70] sm:$0xff] }
  0x13   : > { %770 = vmatpush.bf16.msrb.mxu3 %v761_v5  ;;  %924 = vmatpush.bf16.msrb.mxu0 %v915_v9  ;;  %v2319_v24 = vld [vmem:[%s2493_s29 + $0x80] sm:$0xff]  ;;  %v2313_v25 = vld [vmem:[%s2493_s29 + $0x50] sm:$0xff]  ;;  %v2328_v28 = vld [vmem:[%s2493_s29 + $0xd8] sm:$0xff] }
  0x14   : > { %1856 = vmatmul.msk.bf16.vlgmr.msra.gmra.mxu1 %vm326_vm1, %v2314_v10  ;;  %1858 = vmatmul.msk.bf16.vlgmr.msra.gmra.mxu2 %vm326_vm1, %v2316_v11  ;;  %v2304_v26 = vld [vmem:[%s2493_s29] sm:$0xff]  ;;  %v2320_v27 = vld [vmem:[%s2493_s29 + $0x90] sm:$0xff]  ;;  %v2305_v30 = vld [vmem:[%s2493_s29 + $0x8] sm:$0xff] }
  0x15   : > { %1860 = vmatmul.msk.bf16.vlgmr.msra.gmra.mxu3 %vm326_vm1, %v2318_v12  ;;  %1854 = vmatmul.msk.bf16.vlgmr.msra.gmra.mxu0 %vm326_vm1, %v2312_v13  ;;  %v2336_v29 = vld [vmem:[%s2493_s29 + $0x120] sm:$0xff]  ;;  %v2321_v31 = vld [vmem:[%s2493_s29 + $0x98] sm:$0xff]  ;;  %v2337_v33 = vld [vmem:[%s2493_s29 + $0x128] sm:$0xff] }
  0x16   : > { %1232 = vmatpush.bf16.msra.mxu2 %v1223_v15  ;;  %1078 = vmatpush.bf16.msra.mxu1 %v1069_v19  ;;  %v2329_v32 = vld [vmem:[%s2493_s29 + $0xe0] sm:$0xff]  ;;  %v2306_v34 = vld [vmem:[%s2493_s29 + $0x10] sm:$0xff]  ;;  %v2330_v36 = vld [vmem:[%s2493_s29 + $0xe8] sm:$0xff] }
  0x17   : > { %1386 = vmatpush.bf16.msra.mxu3 %v1377_v18  ;;  %1540 = vmatpush.bf16.msra.mxu0 %v1531_v21  ;;  %v2322_v35 = vld [vmem:[%s2493_s29 + $0xa0] sm:$0xff]  ;;  %v2338_v37 = vld [vmem:[%s2493_s29 + $0x130] sm:$0xff]  ;;  %v2307_v38 = vld [vmem:[%s2493_s29 + $0x18] sm:$0xff] }
  0x18   : > { %v2323_v39 = vld [vmem:[%s2493_s29 + $0xa8] sm:$0xff]  ;;  %v2331_v40 = vld [vmem:[%s2493_s29 + $0xf0] sm:$0xff]  ;;  %v2339_v41 = vld [vmem:[%s2493_s29 + $0x138] sm:$0xff] }
  0x19   : > { %v2308_v42 = vld [vmem:[%s2493_s29 + $0x20] sm:$0xff]  ;;  %v2324_v43 = vld [vmem:[%s2493_s29 + $0xb0] sm:$0xff]  ;;  %v2332_v44 = vld [vmem:[%s2493_s29 + $0xf8] sm:$0xff] }
  0x1a   : > { %v2340_v45 = vld [vmem:[%s2493_s29 + $0x140] sm:$0xff]  ;;  %v2309_v46 = vld [vmem:[%s2493_s29 + $0x28] sm:$0xff]  ;;  %v2325_v47 = vld [vmem:[%s2493_s29 + $0xb8] sm:$0xff] }
  0x1b   : > { %v2333_v48 = vld [vmem:[%s2493_s29 + $0x100] sm:$0xff]  ;;  %v2341_v49 = vld [vmem:[%s2493_s29 + $0x148] sm:$0xff]  ;;  %v2310_v50 = vld [vmem:[%s2493_s29 + $0x30] sm:$0xff] }
  0x1c   : > { %v2326_v51 = vld [vmem:[%s2493_s29 + $0xc0] sm:$0xff]  ;;  %v2334_v53 = vld [vmem:[%s2493_s29 + $0x108] sm:$0xff]  ;;  %v2342_v54 = vld [vmem:[%s2493_s29 + $0x150] sm:$0xff] }
  0x1d   : > { %v2311_v62 = vld [vmem:[%s2493_s29 + $0x38] sm:$0xff]  ;;  %v2327_v63 = vld [vmem:[%s2493_s29 + $0xc8] sm:$0xff]  ;;  %v2335_v1 = vld [vmem:[%s2493_s29 + $0x110] sm:$0xff] }
  0x1e   : > { %v2343_v2 = vld [vmem:[%s2493_s29 + $0x158] sm:$0xff]  ;;  %v2344_v10 = vld [vmem:[%s2493_s29 + $0x168] sm:$0xff]  ;;  %v2360_v13 = vld [vmem:[%s2493_s29 + $0x50] sm:$0xff] }
  0x1f   : > { %v2352_v11 = vld [vmem:[%s2493_s29 + $0x8] sm:$0xff]  ;;  %v2368_v14 = vld [vmem:[%s2493_s29 + $0x98] sm:$0xff] }
  0x24   : > { %1857 = vmatmul.msk.bf16.gmra.mxu1 %vm326_vm1, %v2315_v22  ;;  %1859 = vmatmul.msk.bf16.gmra.mxu2 %vm326_vm1, %v2317_v23 }
  0x25   : > { %1861 = vmatmul.msk.bf16.gmra.mxu3 %vm326_vm1, %v2319_v24  ;;  %1855 = vmatmul.msk.bf16.gmra.mxu0 %vm326_vm1, %v2313_v25 }
  0x34   : > { %1894 = vmatmul.msk.bf16.vlgmr.msrb.gmra.mxu1 %vm326_vm1, %v2304_v26  ;;  %1951 = vmatmul.msk.bf16.vlgmr.msrb.gmra.mxu2 %vm326_vm1, %v2320_v27 }
  0x35   : > { %2008 = vmatmul.msk.bf16.vlgmr.msrb.gmra.mxu3 %vm326_vm1, %v2328_v28  ;;  %2065 = vmatmul.msk.bf16.vlgmr.msrb.gmra.mxu0 %vm326_vm1, %v2336_v29  ;;  %v2345_v28 = vld [vmem:[%s2493_s29 + $0x170] sm:$0xff] }
  0x36   : > { %v2353_v29 = vld [vmem:[%s2493_s29 + $0x10] sm:$0xff] }
  0x44   : > { %1895 = vmatmul.msk.bf16.gmra.mxu1 %vm326_vm1, %v2305_v30  ;;  %1952 = vmatmul.msk.bf16.gmra.mxu2 %vm326_vm1, %v2321_v31  ;;  %v2361_v31 = vld [vmem:[%s2493_s29 + $0x58] sm:$0xff] }
  0x45   : > { %2009 = vmatmul.msk.bf16.gmra.mxu3 %vm326_vm1, %v2329_v32  ;;  %2066 = vmatmul.msk.bf16.gmra.mxu0 %vm326_vm1, %v2337_v33  ;;  %v2369_v32 = vld [vmem:[%s2493_s29 + $0xa0] sm:$0xff] }
  0x54   : > { %1896 = vmatmul.msk.bf16.gmra.mxu1 %vm326_vm1, %v2306_v34  ;;  %1953 = vmatmul.msk.bf16.gmra.mxu2 %vm326_vm1, %v2322_v35 }
  0x55   : > { %2010 = vmatmul.msk.bf16.gmra.mxu3 %vm326_vm1, %v2330_v36  ;;  %2067 = vmatmul.msk.bf16.gmra.mxu0 %vm326_vm1, %v2338_v37 }
  0x64   : > { %1897 = vmatmul.msk.bf16.gmra.mxu1 %vm326_vm1, %v2307_v38  ;;  %1954 = vmatmul.msk.bf16.gmra.mxu2 %vm326_vm1, %v2323_v39 }
  0x65   : > { %2011 = vmatmul.msk.bf16.gmra.mxu3 %vm326_vm1, %v2331_v40  ;;  %2068 = vmatmul.msk.bf16.gmra.mxu0 %vm326_vm1, %v2339_v41 }
  0x74   : > { %1898 = vmatmul.msk.bf16.gmra.mxu1 %vm326_vm1, %v2308_v42  ;;  %1955 = vmatmul.msk.bf16.gmra.mxu2 %vm326_vm1, %v2324_v43 }
  0x75   : > { %2012 = vmatmul.msk.bf16.gmra.mxu3 %vm326_vm1, %v2332_v44  ;;  %2069 = vmatmul.msk.bf16.gmra.mxu0 %vm326_vm1, %v2340_v45 }
  0x84   : > { %1899 = vmatmul.msk.bf16.gmra.mxu1 %vm326_vm1, %v2309_v46  ;;  %1956 = vmatmul.msk.bf16.gmra.mxu2 %vm326_vm1, %v2325_v47 }
  0x85   : > { %2013 = vmatmul.msk.bf16.gmra.mxu3 %vm326_vm1, %v2333_v48  ;;  %2070 = vmatmul.msk.bf16.gmra.mxu0 %vm326_vm1, %v2341_v49  ;;  %v2346_v48 = vld [vmem:[%s2493_s29 + $0x178] sm:$0xff] }
  0x86   : > { %v2354_v49 = vld [vmem:[%s2493_s29 + $0x18] sm:$0xff] }
  0x91   : > { %v2577_v52 = vpop.f32.mrf.mxu1 }
  0x92   : > { %v364_v55 = vpop.f32.mrf.mxu0 }
  0x94   : > { %1900 = vmatmul.msk.bf16.gmra.mxu1 %vm326_vm1, %v2310_v50  ;;  %1957 = vmatmul.msk.bf16.gmra.mxu2 %vm326_vm1, %v2326_v51  ;;  %v2362_v51 = vld [vmem:[%s2493_s29 + $0x60] sm:$0xff] }
  0x95   : > { %2014 = vmatmul.msk.bf16.gmra.mxu3 %vm326_vm1, %v2334_v53  ;;  %2071 = vmatmul.msk.bf16.gmra.mxu0 %vm326_vm1, %v2342_v54  ;;  %v2370_v53 = vld [vmem:[%s2493_s29 + $0xa8] sm:$0xff] }
  0x97   : > { %v2585_v56 = vpop.f32.mrf.mxu2 }
  0x98   : > { %v2587_v57 = vpop.f32.mrf.mxu3 }
  0x99   : > { %v2589_v58 = vpop.f32.mrf.mxu1 }
  0x9a   : > { %v366_v59 = vpop.f32.mrf.mxu0 }
  0x9f   : > { %v2591_v60 = vpop.f32.mrf.mxu2 }
  0xa0   : > { %v2593_v61 = vpop.f32.mrf.mxu3 }
  0xa1   : > { %v2597_v0 = vpop.f32.mrf.mxu1 }
  0xa2   : > { %v369_v3 = vpop.f32.mrf.mxu0 }
  0xa4   : > { %1901 = vmatmul.msk.bf16.gmra.mxu1 %vm326_vm1, %v2311_v62  ;;  %1958 = vmatmul.msk.bf16.gmra.mxu2 %vm326_vm1, %v2327_v63 }
  0xa5   : > { %2015 = vmatmul.msk.bf16.gmra.mxu3 %vm326_vm1, %v2335_v1  ;;  %2072 = vmatmul.msk.bf16.gmra.mxu0 %vm326_vm1, %v2343_v2 }
  0xa7   : > { %v2605_v4 = vpop.f32.mrf.mxu2 }
  0xa8   : > { %v2607_v5 = vpop.f32.mrf.mxu3 }
  0xa9   : > { %v2609_v6 = vpop.f32.mrf.mxu1 }
  0xaa   : > { %v371_v7 = vpop.f32.mrf.mxu0 }
  0xaf   : > { %v2611_v8 = vpop.f32.mrf.mxu2 }
  0xb0   : > { %v2613_v9 = vpop.f32.mrf.mxu3 }
  0xb1   : > { %v480_v12 = vpop.f32.mrf.mxu1 }
  0xb2   : > { %v481_v15 = vadd.f32 %v480_v12, %v364_v55  ;;  %v926_v16 = vpop.f32.mrf.mxu0 }
  0xb4   : > { %2122 = vmatmul.msk.bf16.vlgmr.msra.gmra.mxu1 %vm326_vm1, %v2344_v10  ;;  %2179 = vmatmul.msk.bf16.vlgmr.msra.gmra.mxu2 %vm326_vm1, %v2352_v11 }
  0xb5   : > { %2236 = vmatmul.msk.bf16.vlgmr.msra.gmra.mxu3 %vm326_vm1, %v2360_v13  ;;  %2293 = vmatmul.msk.bf16.vlgmr.msra.gmra.mxu0 %vm326_vm1, %v2368_v14 }
  0xb7   : > { %v618_v17 = vpop.f32.mrf.mxu2 }
  0xb8   : > { %v658_v18 = vadd.f32 %v618_v17, %v481_v15  ;;  %v772_v19 = vpop.f32.mrf.mxu3  ;;  %v2347_v15 = vld [vmem:[%s2493_s29 + $0x180] sm:$0xff] }
  0xb9   : > { %v482_v20 = vpop.f32.mrf.mxu1 }
  0xba   : > { %v812_v21 = vadd.f32 %v772_v19, %v658_v18  ;;  %v483_v22 = vadd.f32 %v482_v20, %v366_v59  ;;  %v928_v23 = vpop.f32.mrf.mxu0  ;;  %v2363_v18 = vld [vmem:[%s2493_s29 + $0x68] sm:$0xff]  ;;  %v2371_v19 = vld [vmem:[%s2493_s29 + $0xb0] sm:$0xff] }
  0xbc   : > { %v2623_v24 = vadd.f32 %v926_v16, %v812_v21  ;;  %v2355_v16 = vld [vmem:[%s2493_s29 + $0x20] sm:$0xff] }
  0xbf   : > { %v620_v25 = vpop.f32.mrf.mxu2 }
  0xc0   : > { %v659_v26 = vadd.f32 %v620_v25, %v483_v22  ;;  %v774_v27 = vpop.f32.mrf.mxu3 }
  0xc1   : > { %v485_v30 = vpop.f32.mrf.mxu1 }
  0xc2   : > { %v813_v33 = vadd.f32 %v774_v27, %v659_v26  ;;  %v486_v34 = vadd.f32 %v485_v30, %v369_v3  ;;  %v931_v35 = vpop.f32.mrf.mxu0 }
  0xc4   : > { %2123 = vmatmul.msk.bf16.gmra.mxu1 %vm326_vm1, %v2345_v28  ;;  %2180 = vmatmul.msk.bf16.gmra.mxu2 %vm326_vm1, %v2353_v29  ;;  %v2631_v36 = vadd.f32 %v928_v23, %v813_v33 }
  0xc5   : > { %2237 = vmatmul.msk.bf16.gmra.mxu3 %vm326_vm1, %v2361_v31  ;;  %2294 = vmatmul.msk.bf16.gmra.mxu0 %vm326_vm1, %v2369_v32 }
  0xc7   : > { %v623_v37 = vpop.f32.mrf.mxu2 }
  0xc8   : > { %v660_v38 = vadd.f32 %v623_v37, %v486_v34  ;;  %v777_v39 = vpop.f32.mrf.mxu3  ;;  %v2348_v34 = vld [vmem:[%s2493_s29 + $0x188] sm:$0xff] }
  0xc9   : > { %v487_v40 = vpop.f32.mrf.mxu1 }
  0xca   : > { %v814_v41 = vadd.f32 %v777_v39, %v660_v38  ;;  %v488_v42 = vadd.f32 %v487_v40, %v371_v7  ;;  %v933_v43 = vpop.f32.mrf.mxu0  ;;  %v2364_v38 = vld [vmem:[%s2493_s29 + $0x70] sm:$0xff]  ;;  %v2372_v39 = vld [vmem:[%s2493_s29 + $0xb8] sm:$0xff] }
  0xcc   : > { %v2635_v44 = vadd.f32 %v931_v35, %v814_v41  ;;  %v2356_v35 = vld [vmem:[%s2493_s29 + $0x28] sm:$0xff] }
  0xcf   : > { %v625_v45 = vpop.f32.mrf.mxu2 }
  0xd0   : > { %v661_v46 = vadd.f32 %v625_v45, %v488_v42  ;;  %v779_v47 = vpop.f32.mrf.mxu3 }
  0xd1   : > { %v490_v50 = vpop.f32.mrf.mxu1 }
  0xd2   : > { %v815_v54 = vadd.f32 %v779_v47, %v661_v46  ;;  %v491_v55 = vadd.f32 %v490_v50, %v2577_v52  ;;  %v936_v59 = vpop.f32.mrf.mxu0 }
  0xd4   : > { %2124 = vmatmul.msk.bf16.gmra.mxu1 %vm326_vm1, %v2346_v48  ;;  %2181 = vmatmul.msk.bf16.gmra.mxu2 %vm326_vm1, %v2354_v49  ;;  %v2644_v62 = vadd.f32 %v933_v43, %v815_v54 }
  0xd5   : > { %2238 = vmatmul.msk.bf16.gmra.mxu3 %vm326_vm1, %v2362_v51  ;;  %2295 = vmatmul.msk.bf16.gmra.mxu0 %vm326_vm1, %v2370_v53 }
  0xd7   : > { %v628_v63 = vpop.f32.mrf.mxu2 }
  0xd8   : > { %v662_v1 = vadd.f32 %v628_v63, %v491_v55  ;;  %v782_v2 = vpop.f32.mrf.mxu3  ;;  %v2357_v63 = vld [vmem:[%s2493_s29 + $0x30] sm:$0xff] }
  0xd9   : > { %v492_v3 = vpop.f32.mrf.mxu1 }
  0xda   : > { %v816_v52 = vadd.f32 %v782_v2, %v662_v1  ;;  %v493_v7 = vadd.f32 %v492_v3, %v2589_v58  ;;  %v938_v10 = vpop.f32.mrf.mxu0  ;;  %v2365_v2 = vld [vmem:[%s2493_s29 + $0x78] sm:$0xff]  ;;  %v2373_v3 = vld [vmem:[%s2493_s29 + $0xc0] sm:$0xff] }
  0xdc   : > { %v2649_v11 = vadd.f32 %v936_v59, %v816_v52  ;;  %v2349_v59 = vld [vmem:[%s2493_s29 + $0x190] sm:$0xff] }
  0xdf   : > { %v630_v12 = vpop.f32.mrf.mxu2 }
  0xe0   : > { %v663_v13 = vadd.f32 %v630_v12, %v493_v7  ;;  %v784_v14 = vpop.f32.mrf.mxu3 }
  0xe1   : > { %v495_v17 = vpop.f32.mrf.mxu1 }
  0xe2   : > { %v817_v20 = vadd.f32 %v784_v14, %v663_v13  ;;  %v496_v21 = vadd.f32 %v495_v17, %v2597_v0  ;;  %v941_v22 = vpop.f32.mrf.mxu0 }
  0xe4   : > { %2125 = vmatmul.msk.bf16.gmra.mxu1 %vm326_vm1, %v2347_v15  ;;  %2182 = vmatmul.msk.bf16.gmra.mxu2 %vm326_vm1, %v2355_v16  ;;  %v2658_v58 = vadd.f32 %v938_v10, %v817_v20 }
  0xe5   : > { %2239 = vmatmul.msk.bf16.gmra.mxu3 %vm326_vm1, %v2363_v18  ;;  %2296 = vmatmul.msk.bf16.gmra.mxu0 %vm326_vm1, %v2371_v19 }
  0xe7   : > { %v633_v23 = vpop.f32.mrf.mxu2 }
  0xe8   : > { %v664_v25 = vadd.f32 %v633_v23, %v496_v21  ;;  %v787_v26 = vpop.f32.mrf.mxu3  ;;  %v2358_v23 = vld [vmem:[%s2493_s29 + $0x38] sm:$0xff] }
  0xe9   : > { %v497_v27 = vpop.f32.mrf.mxu1 }
  0xea   : > { %v818_v0 = vadd.f32 %v787_v26, %v664_v25  ;;  %v498_v28 = vadd.f32 %v497_v27, %v2609_v6  ;;  %v943_v29 = vpop.f32.mrf.mxu0  ;;  %v2366_v26 = vld [vmem:[%s2493_s29 + $0x80] sm:$0xff]  ;;  %v2374_v27 = vld [vmem:[%s2493_s29 + $0xc8] sm:$0xff] }
  0xec   : > { %v2663_v30 = vadd.f32 %v941_v22, %v818_v0  ;;  %v2350_v22 = vld [vmem:[%s2493_s29 + $0x198] sm:$0xff] }
  0xef   : > { %v635_v31 = vpop.f32.mrf.mxu2 }
  0xf0   : > { %v665_v32 = vadd.f32 %v635_v31, %v498_v28  ;;  %v789_v33 = vpop.f32.mrf.mxu3 }
  0xf1   : > { %v500_v37 = vpop.f32.mrf.mxu1 }
  0xf2   : > { %v819_v40 = vadd.f32 %v789_v33, %v665_v32  ;;  %v946_v41 = vpop.f32.mrf.mxu0  ;;  %v501_v6 = vadd.f32 %v500_v37, %v2585_v56 }
  0xf4   : > { %2126 = vmatmul.msk.bf16.gmra.mxu1 %vm326_vm1, %v2348_v34  ;;  %2183 = vmatmul.msk.bf16.gmra.mxu2 %vm326_vm1, %v2356_v35  ;;  %v2671_v42 = vadd.f32 %v943_v29, %v819_v40 }
  0xf5   : > { %2240 = vmatmul.msk.bf16.gmra.mxu3 %vm326_vm1, %v2364_v38  ;;  %2297 = vmatmul.msk.bf16.gmra.mxu0 %vm326_vm1, %v2372_v39 }
  0xf7   : > { %v638_v43 = vpop.f32.mrf.mxu2 }
  0xf8   : > { %v666_v45 = vadd.f32 %v638_v43, %v501_v6  ;;  %v792_v46 = vpop.f32.mrf.mxu3  ;;  %v2351_v6 = vld [vmem:[%s2493_s29 + $0x1a0] sm:$0xff] }
  0xf9   : > { %v502_v47 = vpop.f32.mrf.mxu1  ;;  %v2359_v43 = vld [vmem:[%s2493_s29 + $0x40] sm:$0xff] }
  0xfa   : > { %v820_v48 = vadd.f32 %v792_v46, %v666_v45  ;;  %v948_v49 = vpop.f32.mrf.mxu0  ;;  %v503_v51 = vadd.f32 %v502_v47, %v2591_v60  ;;  %v2367_v46 = vld [vmem:[%s2493_s29 + $0x88] sm:$0xff]  ;;  %v2375_v47 = vld [vmem:[%s2493_s29 + $0xd0] sm:$0xff] }
  0xfc   : > { %v2676_v50 = vadd.f32 %v946_v41, %v820_v48 }
  0xff   : > { %v640_v53 = vpop.f32.mrf.mxu2 }
 0x100   : > { %v667_v54 = vadd.f32 %v640_v53, %v503_v51  ;;  %v794_v55 = vpop.f32.mrf.mxu3 }
 0x101   : > { %v505_v1 = vpop.f32.mrf.mxu1 }
 0x102   : > { %v821_v56 = vadd.f32 %v794_v55, %v667_v54  ;;  %v951_v52 = vpop.f32.mrf.mxu0  ;;  %v506_v60 = vadd.f32 %v505_v1, %v2605_v4 }
 0x104   : > { %2127 = vmatmul.msk.bf16.gmra.mxu1 %vm326_vm1, %v2349_v59  ;;  %2184 = vmatmul.msk.bf16.gmra.mxu2 %vm326_vm1, %v2357_v63  ;;  %v2685_v7 = vadd.f32 %v948_v49, %v821_v56 }
 0x105   : > { %2241 = vmatmul.msk.bf16.gmra.mxu3 %vm326_vm1, %v2365_v2  ;;  %2298 = vmatmul.msk.bf16.gmra.mxu0 %vm326_vm1, %v2373_v3 }
 0x107   : > { %v643_v10 = vpop.f32.mrf.mxu2 }
 0x108   : > { %v668_v12 = vadd.f32 %v643_v10, %v506_v60  ;;  %v797_v13 = vpop.f32.mrf.mxu3 }
 0x109   : > { %v507_v14 = vpop.f32.mrf.mxu1 }
 0x10a   : > { %v822_v15 = vadd.f32 %v797_v13, %v668_v12  ;;  %v953_v16 = vpop.f32.mrf.mxu0  ;;  %v508_v18 = vadd.f32 %v507_v14, %v2611_v8 }
 0x10c   : > { %v2690_v17 = vadd.f32 %v951_v52, %v822_v15 }
 0x10f   : > { %v645_v19 = vpop.f32.mrf.mxu2 }
 0x110   : > { %v669_v20 = vadd.f32 %v645_v19, %v508_v18  ;;  %v799_v21 = vpop.f32.mrf.mxu3 }
 0x111   : > { %v510_v25 = vpop.f32.mrf.mxu1 }
 0x112   : > { %v823_v4 = vadd.f32 %v799_v21, %v669_v20  ;;  %v956_v0 = vpop.f32.mrf.mxu0  ;;  %v511_v8 = vadd.f32 %v510_v25, %v2587_v57 }
 0x114   : > { %2128 = vmatmul.msk.bf16.gmra.mxu1 %vm326_vm1, %v2350_v22  ;;  %2185 = vmatmul.msk.bf16.gmra.mxu2 %vm326_vm1, %v2358_v23  ;;  %v2699_v28 = vadd.f32 %v953_v16, %v823_v4 }
 0x115   : > { %2242 = vmatmul.msk.bf16.gmra.mxu3 %vm326_vm1, %v2366_v26  ;;  %2299 = vmatmul.msk.bf16.gmra.mxu0 %vm326_vm1, %v2374_v27 }
 0x117   : > { %v648_v29 = vpop.f32.mrf.mxu2 }
 0x118   : > { %v670_v31 = vadd.f32 %v648_v29, %v511_v8  ;;  %v802_v32 = vpop.f32.mrf.mxu3 }
 0x119   : > { %v512_v33 = vpop.f32.mrf.mxu1 }
 0x11a   : > { %v824_v34 = vadd.f32 %v802_v32, %v670_v31  ;;  %v958_v35 = vpop.f32.mrf.mxu0  ;;  %v513_v38 = vadd.f32 %v512_v33, %v2593_v61 }
 0x11c   : > { %v2704_v37 = vadd.f32 %v956_v0, %v824_v34 }
 0x11f   : > { %v650_v39 = vpop.f32.mrf.mxu2 }
 0x120   : > { %v671_v40 = vadd.f32 %v650_v39, %v513_v38  ;;  %v804_v41 = vpop.f32.mrf.mxu3 }
 0x121   : > { %v515_v45 = vpop.f32.mrf.mxu1 }
 0x122   : > { %v825_v57 = vadd.f32 %v804_v41, %v671_v40  ;;  %v961_v48 = vpop.f32.mrf.mxu0  ;;  %v516_v61 = vadd.f32 %v515_v45, %v2607_v5 }
 0x124   : > { %2129 = vmatmul.msk.bf16.gmra.mxu1 %vm326_vm1, %v2351_v6  ;;  %2186 = vmatmul.msk.bf16.gmra.mxu2 %vm326_vm1, %v2359_v43  ;;  %v2713_v49 = vadd.f32 %v958_v35, %v825_v57 }
 0x125   : > { %2243 = vmatmul.msk.bf16.gmra.mxu3 %vm326_vm1, %v2367_v46  ;;  %2300 = vmatmul.msk.bf16.gmra.mxu0 %vm326_vm1, %v2375_v47 }
 0x127   : > { %v653_v51 = vpop.f32.mrf.mxu2 }
 0x128   : > { %v672_v53 = vadd.f32 %v653_v51, %v516_v61  ;;  %v807_v54 = vpop.f32.mrf.mxu3 }
 0x129   : > { %v517_v55 = vpop.f32.mrf.mxu1 }
 0x12a   : > { %v826_v59 = vadd.f32 %v807_v54, %v672_v53  ;;  %v963_v63 = vpop.f32.mrf.mxu0  ;;  %v518_v2 = vadd.f32 %v517_v55, %v2613_v9  ;;  %v2728_v9 = vld [vmem:[%s2809_s2] ss:$0 sm:$0xff] }
 0x12c   : > { %v2718_v1 = vadd.f32 %v961_v48, %v826_v59 }
 0x12f   : > { %v655_v3 = vpop.f32.mrf.mxu2 }
 0x130   : > { %v673_v56 = vadd.f32 %v655_v3, %v518_v2  ;;  %v809_v52 = vpop.f32.mrf.mxu3 }
 0x131   : > { %v1080_v60 = vpop.f32.mrf.mxu1 }
 0x132   : > { %v827_v10 = vadd.f32 %v809_v52, %v673_v56  ;;  %v1542_v12 = vpop.f32.mrf.mxu0  ;;  %v1120_v5 = vadd.f32 %v1080_v60, %v2623_v24 }
 0x134   : > { %v2721_v13 = vadd.f32 %v963_v63, %v827_v10 }
 0x137   : > { %v1234_v14 = vpop.f32.mrf.mxu2 }
 0x138   : > { %v1274_v15 = vadd.f32 %v1234_v14, %v1120_v5  ;;  %v1388_v16 = vpop.f32.mrf.mxu3 }
 0x139   : > { %v1082_v18 = vpop.f32.mrf.mxu1 }
 0x13a   : > { %v1428_v19 = vadd.f32 %v1388_v16, %v1274_v15  ;;  %v1544_v20 = vpop.f32.mrf.mxu0  ;;  %v1121_v22 = vadd.f32 %v1082_v18, %v2631_v36 }
 0x13c   : > { %v1582_v21 = vadd.f32 %v1542_v12, %v1428_v19 }
 0x13e   : > { %v1602_v24 = vadd.f32 %v2728_v9, %v1582_v21 }
 0x13f   : > { %v1236_v23 = vpop.f32.mrf.mxu2 }
 0x140   : > { %1618 = vst.msk [vmem:[%s2733_s20] sm:$0xff] %vm326_vm1, %v1602_v24  ;;  %v1275_v25 = vadd.f32 %v1236_v23, %v1121_v22  ;;  %v1390_v26 = vpop.f32.mrf.mxu3 }
 0x141   : > { %v1085_v27 = vpop.f32.mrf.mxu1 }
 0x142   : > { %v1429_v4 = vadd.f32 %v1390_v26, %v1275_v25  ;;  %v1547_v0 = vpop.f32.mrf.mxu0  ;;  %v1122_v31 = vadd.f32 %v1085_v27, %v2635_v44 }
 0x144   : > { %v1583_v8 = vadd.f32 %v1544_v20, %v1429_v4 }
 0x146   : > { %v1603_v29 = vadd.f32 %v2728_v9, %v1583_v8 }
 0x147   : > { %v1239_v32 = vpop.f32.mrf.mxu2 }
 0x148   : > { %1619 = vst.msk [vmem:[%s2733_s20 + $0x8] sm:$0xff] %vm326_vm1, %v1603_v29  ;;  %v1276_v33 = vadd.f32 %v1239_v32, %v1122_v31  ;;  %v1393_v34 = vpop.f32.mrf.mxu3 }
 0x149   : > { %v1087_v36 = vpop.f32.mrf.mxu1 }
 0x14a   : > { %v1430_v35 = vadd.f32 %v1393_v34, %v1276_v33  ;;  %v1549_v38 = vpop.f32.mrf.mxu0  ;;  %v1123_v41 = vadd.f32 %v1087_v36, %v2644_v62 }
 0x14c   : > { %v1584_v39 = vadd.f32 %v1547_v0, %v1430_v35 }
 0x14e   : > { %v1604_v40 = vadd.f32 %v2728_v9, %v1584_v39 }
 0x14f   : > { %v1241_v6 = vpop.f32.mrf.mxu2 }
 0x150   : > { %1620 = vst.msk [vmem:[%s2733_s20 + $0x10] sm:$0xff] %vm326_vm1, %v1604_v40  ;;  %v1277_v43 = vadd.f32 %v1241_v6, %v1123_v41  ;;  %v1395_v45 = vpop.f32.mrf.mxu3 }
 0x151   : > { %v1090_v44 = vpop.f32.mrf.mxu1 }
 0x152   : > { %v1431_v46 = vadd.f32 %v1395_v45, %v1277_v43  ;;  %v1552_v47 = vpop.f32.mrf.mxu0  ;;  %v1124_v61 = vadd.f32 %v1090_v44, %v2649_v11 }
 0x154   : > { %v1585_v57 = vadd.f32 %v1549_v38, %v1431_v46 }
 0x156   : > { %v1605_v48 = vadd.f32 %v2728_v9, %v1585_v57 }
 0x157   : > { %v1244_v51 = vpop.f32.mrf.mxu2 }
 0x158   : > { %1621 = vst.msk [vmem:[%s2733_s20 + $0x18] sm:$0xff] %vm326_vm1, %v1605_v48  ;;  %v1278_v53 = vadd.f32 %v1244_v51, %v1124_v61  ;;  %v1398_v54 = vpop.f32.mrf.mxu3 }
 0x159   : > { %v1092_v62 = vpop.f32.mrf.mxu1 }
 0x15a   : > { %v1432_v55 = vadd.f32 %v1398_v54, %v1278_v53  ;;  %v1554_v59 = vpop.f32.mrf.mxu0  ;;  %v1125_v3 = vadd.f32 %v1092_v62, %v2658_v58 }
 0x15c   : > { %v1586_v63 = vadd.f32 %v1552_v47, %v1432_v55 }
 0x15e   : > { %v1606_v2 = vadd.f32 %v2728_v9, %v1586_v63 }
 0x15f   : > { %v1246_v56 = vpop.f32.mrf.mxu2 }
 0x160   : > { %1622 = vst.msk [vmem:[%s2733_s20 + $0x20] sm:$0xff] %vm326_vm1, %v1606_v2  ;;  %v1279_v52 = vadd.f32 %v1246_v56, %v1125_v3  ;;  %v1400_v60 = vpop.f32.mrf.mxu3 }
 0x161   : > { %v1095_v11 = vpop.f32.mrf.mxu1 }
 0x162   : > { %v1433_v10 = vadd.f32 %v1400_v60, %v1279_v52  ;;  %v1557_v12 = vpop.f32.mrf.mxu0  ;;  %v1126_v15 = vadd.f32 %v1095_v11, %v2663_v30 }
 0x164   : > { %v1587_v5 = vadd.f32 %v1554_v59, %v1433_v10 }
 0x166   : > { %v1607_v14 = vadd.f32 %v2728_v9, %v1587_v5 }
 0x167   : > { %v1249_v16 = vpop.f32.mrf.mxu2 }
 0x168   : > { %1623 = vst.msk [vmem:[%s2733_s20 + $0x28] sm:$0xff] %vm326_vm1, %v1607_v14  ;;  %v1280_v18 = vadd.f32 %v1249_v16, %v1126_v15  ;;  %v1403_v19 = vpop.f32.mrf.mxu3 }
 0x169   : > { %v1097_v58 = vpop.f32.mrf.mxu1 }
 0x16a   : > { %v1434_v20 = vadd.f32 %v1403_v19, %v1280_v18  ;;  %v1559_v21 = vpop.f32.mrf.mxu0  ;;  %v1127_v23 = vadd.f32 %v1097_v58, %v2671_v42 }
 0x16c   : > { %v1588_v24 = vadd.f32 %v1557_v12, %v1434_v20 }
 0x16e   : > { %v1608_v22 = vadd.f32 %v2728_v9, %v1588_v24 }
 0x16f   : > { %v1251_v25 = vpop.f32.mrf.mxu2 }
 0x170   : > { %1624 = vst.msk [vmem:[%s2733_s20 + $0x30] sm:$0xff] %vm326_vm1, %v1608_v22  ;;  %v1281_v26 = vadd.f32 %v1251_v25, %v1127_v23  ;;  %v1405_v27 = vpop.f32.mrf.mxu3 }
 0x171   : > { %v1100_v30 = vpop.f32.mrf.mxu1 }
 0x172   : > { %v1435_v4 = vadd.f32 %v1405_v27, %v1281_v26  ;;  %v1562_v0 = vpop.f32.mrf.mxu0  ;;  %v1128_v31 = vadd.f32 %v1100_v30, %v2676_v50 }
 0x174   : > { %v1589_v8 = vadd.f32 %v1559_v21, %v1435_v4 }
 0x176   : > { %v1609_v29 = vadd.f32 %v2728_v9, %v1589_v8 }
 0x177   : > { %v1254_v32 = vpop.f32.mrf.mxu2 }
 0x178   : > { %1625 = vst.msk [vmem:[%s2733_s20 + $0x38] sm:$0xff] %vm326_vm1, %v1609_v29  ;;  %v1282_v33 = vadd.f32 %v1254_v32, %v1128_v31  ;;  %v1408_v34 = vpop.f32.mrf.mxu3 }
 0x179   : > { %v1102_v42 = vpop.f32.mrf.mxu1 }
 0x17a   : > { %v1436_v36 = vadd.f32 %v1408_v34, %v1282_v33  ;;  %v1564_v35 = vpop.f32.mrf.mxu0  ;;  %v1129_v40 = vadd.f32 %v1102_v42, %v2685_v7 }
 0x17c   : > { %v1590_v38 = vadd.f32 %v1562_v0, %v1436_v36 }
 0x17e   : > { %v1610_v39 = vadd.f32 %v2728_v9, %v1590_v38 }
 0x17f   : > { %v1256_v41 = vpop.f32.mrf.mxu2 }
 0x180   : > { %1626 = vst.msk [vmem:[%s2733_s20 + $0x40] sm:$0xff] %vm326_vm1, %v1610_v39  ;;  %v1283_v6 = vadd.f32 %v1256_v41, %v1129_v40  ;;  %v1410_v43 = vpop.f32.mrf.mxu3 }
 0x181   : > { %v1105_v50 = vpop.f32.mrf.mxu1 }
 0x182   : > { %v1437_v45 = vadd.f32 %v1410_v43, %v1283_v6  ;;  %v1567_v44 = vpop.f32.mrf.mxu0  ;;  %v1130_v57 = vadd.f32 %v1105_v50, %v2690_v17 }
 0x184   : > { %v1591_v46 = vadd.f32 %v1564_v35, %v1437_v45 }
 0x186   : > { %v1611_v47 = vadd.f32 %v2728_v9, %v1591_v46 }
 0x187   : > { %v1259_v48 = vpop.f32.mrf.mxu2 }
 0x188   : > { %1627 = vst.msk [vmem:[%s2733_s20 + $0x48] sm:$0xff] %vm326_vm1, %v1611_v47  ;;  %v1284_v61 = vadd.f32 %v1259_v48, %v1130_v57  ;;  %v1413_v51 = vpop.f32.mrf.mxu3 }
 0x189   : > { %v1107_v7 = vpop.f32.mrf.mxu1 }
 0x18a   : > { %v1438_v53 = vadd.f32 %v1413_v51, %v1284_v61  ;;  %v1569_v54 = vpop.f32.mrf.mxu0  ;;  %v1131_v59 = vadd.f32 %v1107_v7, %v2699_v28 }
 0x18c   : > { %v1592_v62 = vadd.f32 %v1567_v44, %v1438_v53 }
 0x18e   : > { %v1612_v55 = vadd.f32 %v2728_v9, %v1592_v62 }
 0x18f   : > { %v1261_v63 = vpop.f32.mrf.mxu2 }
 0x190   : > { %1628 = vst.msk [vmem:[%s2733_s20 + $0x50] sm:$0xff] %vm326_vm1, %v1612_v55  ;;  %v1285_v2 = vadd.f32 %v1261_v63, %v1131_v59  ;;  %v1415_v3 = vpop.f32.mrf.mxu3 }
 0x191   : > { %v1110_v17 = vpop.f32.mrf.mxu1 }
 0x192   : > { %v1439_v56 = vadd.f32 %v1415_v3, %v1285_v2  ;;  %v1572_v60 = vpop.f32.mrf.mxu0  ;;  %v1132_v10 = vadd.f32 %v1110_v17, %v2704_v37 }
 0x194   : > { %v1593_v52 = vadd.f32 %v1569_v54, %v1439_v56 }
 0x196   : > { %v1613_v11 = vadd.f32 %v2728_v9, %v1593_v52 }
 0x197   : > { %v1264_v12 = vpop.f32.mrf.mxu2 }
 0x198   : > { %1629 = vst.msk [vmem:[%s2733_s20 + $0x58] sm:$0xff] %vm326_vm1, %v1613_v11  ;;  %v1286_v5 = vadd.f32 %v1264_v12, %v1132_v10  ;;  %v1418_v14 = vpop.f32.mrf.mxu3 }
 0x199   : > { %v1112_v28 = vpop.f32.mrf.mxu1 }
 0x19a   : > { %v1440_v15 = vadd.f32 %v1418_v14, %v1286_v5  ;;  %v1133_v19 = vadd.f32 %v1112_v28, %v2713_v49  ;;  %v1574_v58 = vpop.f32.mrf.mxu0 }
 0x19c   : > { %v1594_v16 = vadd.f32 %v1572_v60, %v1440_v15 }
 0x19e   : > { %v1614_v18 = vadd.f32 %v2728_v9, %v1594_v16 }
 0x19f   : > { %v1266_v20 = vpop.f32.mrf.mxu2 }
 0x1a0   : > { %1630 = vst.msk [vmem:[%s2733_s20 + $0x60] sm:$0xff] %vm326_vm1, %v1614_v18  ;;  %v1287_v21 = vadd.f32 %v1266_v20, %v1133_v19  ;;  %v1420_v24 = vpop.f32.mrf.mxu3 }
 0x1a1   : > { %v1115_v37 = vpop.f32.mrf.mxu1 }
 0x1a2   : > { %v1441_v22 = vadd.f32 %v1420_v24, %v1287_v21  ;;  %v1134_v26 = vadd.f32 %v1115_v37, %v2718_v1  ;;  %v1577_v4 = vpop.f32.mrf.mxu0 }
 0x1a4   : > { %v1595_v23 = vadd.f32 %v1574_v58, %v1441_v22 }
 0x1a6   : > { %v1615_v25 = vadd.f32 %v2728_v9, %v1595_v23 }
 0x1a7   : > { %v1269_v27 = vpop.f32.mrf.mxu2 }
 0x1a8   : > { %1631 = vst.msk [vmem:[%s2733_s20 + $0x68] sm:$0xff] %vm326_vm1, %v1615_v25  ;;  %v1288_v30 = vadd.f32 %v1269_v27, %v1134_v26  ;;  %v1423_v49 = vpop.f32.mrf.mxu3 }
 0x1a9   : > { %v1117_v8 = vpop.f32.mrf.mxu1 }
 0x1aa   : > { %v1442_v0 = vadd.f32 %v1423_v49, %v1288_v30  ;;  %v1135_v32 = vadd.f32 %v1117_v8, %v2721_v13  ;;  %v1579_v36 = vpop.f32.mrf.mxu0 }
 0x1ac   : > { %v1596_v29 = vadd.f32 %v1577_v4, %v1442_v0 }
 0x1ae   : > { %v1616_v31 = vadd.f32 %v2728_v9, %v1596_v29 }
 0x1af   : > { %v1271_v33 = vpop.f32.mrf.mxu2 }
 0x1b0   : > { %1632 = vst.msk [vmem:[%s2733_s20 + $0x70] sm:$0xff] %vm326_vm1, %v1616_v31  ;;  %v1289_v34 = vadd.f32 %v1271_v33, %v1135_v32  ;;  %v1425_v42 = vpop.f32.mrf.mxu3 }
 0x1b2   : > { %v1443_v1 = vadd.f32 %v1425_v42, %v1289_v34 }
 0x1b4   : > { %v1597_v35 = vadd.f32 %v1579_v36, %v1443_v1 }
 0x1b6   : > { %v1617_v38 = vadd.f32 %v2728_v9, %v1597_v35 }
 0x1b8   : > { %1633 = vst.msk [vmem:[%s2733_s20 + $0x78] sm:$0xff] %vm326_vm1, %v1617_v38 }
 0x1b9 PF: > { %s13_s14 = sadd.s32 1, %s2427_s14   ;;  %s2811_s12 = smov %s2423_s13 }
 0x1ba   : > { %p10_p5 = scmp.ge.s32.totalorder %s13_s14, 4   ;;  %s2812_s13 = smov %s2814_s15 }
 0x1bc   :  { %12 = sbr.rel (!%p10_p5) target bundleno = 2 (0x2), region = 85 }

</bundles_post_ra>
